<compile_context>
chip_gen: v5e
topology: v5e:2x2
jax: 0.10.0
libtpu: 0.0.40
codegen_flags: <defaults>
</compile_context>

<pallas_src>
import functools

import jax
import jax.numpy as jnp
import numpy as np
from jax.experimental import pallas as pl
from jax.experimental.pallas import tpu as pltpu

# ---------------------------------------------------------------------------
# Model configuration (small, deterministic).
# ---------------------------------------------------------------------------
BATCH = 2
SEQ_LEN = 16          # encoder length
LABEL_LEN = 8
PRED_LEN = 8          # forecast horizon
ENC_IN = 4            # encoder input features
DEC_IN = 4            # decoder input features
C_OUT = 4             # output channels (unused: uncertainty head omitted)
MARK_DIM = 4          # time-feature ("x_mark") width
D_MODEL = 32          # hidden size of the base model

P_DROP1 = 0.10        # mc_dropout1
P_DROP2 = 0.15        # mc_dropout2


# ---------------------------------------------------------------------------
# Fused kernel: temporal enhancement + base-model stand-in + MC dropout head.
# One grid step == one MC sample. All intermediates stay in registers/VMEM.
#
#   x_enc2d  : [B*S, ENC_IN]      x_mark2d : [B*S, MARK_DIM]
#   w_te     : [MARK_DIM, ENC_IN] (first ENC_IN cols of the d_model embedding)
#   pool     : [B, B*S]           (block-diagonal 1/S -> pooled mean via MXU)
#   x_dec2d  : [B*P, DEC_IN]      w_dec : [DEC_IN, D_MODEL]
#   w_enc    : [ENC_IN, D_MODEL]  b_base: [1, D_MODEL]
#   bcast    : [B*P, B]           (broadcast enc_term per batch via MXU)
#   u1, u2   : [MC, B*P, D_MODEL] (uniform randoms for the two dropout layers)
#   pred     : [MC, B*P, D_MODEL]
# ---------------------------------------------------------------------------
def _fused_kernel(x_enc_ref, x_mark_ref, w_te_ref, pool_ref, x_dec_ref,
                  w_dec_ref, w_enc_ref, b_base_ref, bcast_ref,
                  u1_ref, u2_ref, pred_ref):
    # 1) temporal embedding enhancement
    x_enh = x_enc_ref[...] + jnp.dot(
        x_mark_ref[...], w_te_ref[...], preferred_element_type=jnp.float32)   # [B*S, ENC_IN]

    # 2) base model stand-in (all 2-D MXU matmuls; mean is folded into `pool`)
    pooled = jnp.dot(pool_ref[...], x_enh,
                     preferred_element_type=jnp.float32)                      # [B, ENC_IN]
    enc_term = jnp.dot(pooled, w_enc_ref[...],
                       preferred_element_type=jnp.float32)                    # [B, D_MODEL]
    dec_term = jnp.dot(x_dec_ref[...], w_dec_ref[...],
                       preferred_element_type=jnp.float32)                    # [B*P, D_MODEL]
    base = (dec_term
            + jnp.dot(bcast_ref[...], enc_term, preferred_element_type=jnp.float32)
            + b_base_ref[...])                                                # [B*P, D_MODEL]

    # 3) MC dropout chain: hidden = drop_0.10(base); prediction = drop_0.15(hidden)
    u1 = u1_ref[0]
    u2 = u2_ref[0]
    hidden = jnp.where(u1 >= P_DROP1, base * (1.0 / (1.0 - P_DROP1)), 0.0)
    pred_ref[0] = jnp.where(u2 >= P_DROP2, hidden * (1.0 / (1.0 - P_DROP2)), 0.0)


def _fused_call(x_enc2d, x_mark2d, w_te, pool, x_dec2d, w_dec, w_enc,
                b_base2d, bcast, u1, u2, mc_samples):
    n = x_dec2d.shape[0]                 # B * PRED_LEN

    def const_spec(arr):
        return pl.BlockSpec(arr.shape, lambda m: (0,) * arr.ndim)

    per_sample = pl.BlockSpec((1, n, D_MODEL), lambda m: (m, 0, 0))

    return pl.pallas_call(
        _fused_kernel,
        grid=(mc_samples,),
        in_specs=[
            const_spec(x_enc2d), const_spec(x_mark2d), const_spec(w_te),
            const_spec(pool), const_spec(x_dec2d), const_spec(w_dec),
            const_spec(w_enc), const_spec(b_base2d), const_spec(bcast),
            per_sample, per_sample,
        ],
        out_specs=per_sample,
        out_shape=jax.ShapeDtypeStruct((mc_samples, n, D_MODEL), jnp.float32),
        compiler_params=pltpu.CompilerParams(
            dimension_semantics=("parallel",)),   # MC samples split across TCs on v7x
    )(x_enc2d, x_mark2d, w_te, pool, x_dec2d, w_dec, w_enc, b_base2d, bcast, u1, u2)


# ---------------------------------------------------------------------------
# Parameter construction (deterministic).
# ---------------------------------------------------------------------------
def init_params(key):
    ks = jax.random.split(key, 4)
    scale = 0.02
    return {
        # TimeFeatureEmbedding: Linear(mark_dim -> d_model, bias=False)
        "w_temporal": scale * jax.random.normal(ks[0], (MARK_DIM, D_MODEL), jnp.float32),
        # base-model stand-in
        "w_dec": scale * jax.random.normal(ks[1], (DEC_IN, D_MODEL), jnp.float32),
        "w_enc": scale * jax.random.normal(ks[2], (ENC_IN, D_MODEL), jnp.float32),
        "b_base": scale * jax.random.normal(ks[3], (D_MODEL,), jnp.float32),
    }


# ---------------------------------------------------------------------------
# Forward pass. `dropout_rng` is traced (no recompiles across MC samples);
# `mc_samples` is a static grid size.
# ---------------------------------------------------------------------------
@functools.partial(jax.jit, static_argnames=("mc_samples",))
def hf_bayesian_autoformer_predict(params, x_enc, x_mark_enc, x_dec, x_mark_dec,
                                   dropout_rng, mc_samples=1):
    b, s, _ = x_enc.shape
    n = b * PRED_LEN

    # 1) temporal embedding slice == TimeFeatureEmbedding(x_mark_enc)[:, :, :enc_in]
    w_te_slice = params["w_temporal"][:, :ENC_IN]
    x_enc2d = x_enc.reshape(b * s, ENC_IN)
    x_mark2d = x_mark_enc.reshape(b * s, MARK_DIM)

    # 2) decoder tail, flattened to a single 2-D matmul operand
    x_dec2d = x_dec[:, -PRED_LEN:, :].reshape(n, DEC_IN)

    # constant pooling / broadcast matrices (mean over time routed through the MXU)
    pool = jnp.asarray(np.kron(np.eye(b), np.ones((1, s))) / s, jnp.float32)       # [B, B*S]
    bcast = jnp.asarray(np.kron(np.eye(b), np.ones((PRED_LEN, 1))), jnp.float32)   # [B*P, B]

    # 3) dropout randoms: one uniform draw per dropout layer per MC sample
    k1, k2 = jax.random.split(dropout_rng)
    u1 = jax.random.uniform(k1, (mc_samples, n, D_MODEL), jnp.float32)
    u2 = jax.random.uniform(k2, (mc_samples, n, D_MODEL), jnp.float32)

    pred = _fused_call(x_enc2d, x_mark2d, w_te_slice, pool, x_dec2d,
                       params["w_dec"], params["w_enc"],
                       params["b_base"].reshape(1, D_MODEL), bcast,
                       u1, u2, mc_samples)
    return pred.reshape(mc_samples, b, PRED_LEN, D_MODEL)


def hf_bayesian_autoformer_forward(params, x_enc, x_mark_enc, x_dec, x_mark_dec,
                                   dropout_rng):
    """Mirrors HFBayesianAutoformer.forward: one MC sample, returns `prediction`."""
    return hf_bayesian_autoformer_predict(params, x_enc, x_mark_enc, x_dec, x_mark_dec,
                                          dropout_rng, mc_samples=1)[0]


# ---------------------------------------------------------------------------
# Main
# ---------------------------------------------------------------------------
if __name__ == "__main__":
    key = jax.random.PRNGKey(0)
    k_param, k_enc, k_menc, k_dec, k_mdec, k_drop = jax.random.split(key, 6)

    params = init_params(k_param)

    x_enc = jax.random.normal(k_enc, (BATCH, SEQ_LEN, ENC_IN), jnp.float32)
    x_mark_enc = jax.random.normal(k_menc, (BATCH, SEQ_LEN, MARK_DIM), jnp.float32)
    x_dec = jax.random.normal(k_dec, (BATCH, LABEL_LEN + PRED_LEN, DEC_IN), jnp.float32)
    x_mark_dec = jax.random.normal(k_mdec, (BATCH, LABEL_LEN + PRED_LEN, MARK_DIM), jnp.float32)

    # single-sample forward (matches PyTorch forward semantics)
    pred = hf_bayesian_autoformer_forward(params, x_enc, x_mark_enc, x_dec, x_mark_dec, k_drop)
    pred = jax.block_until_ready(pred)
    assert pred.shape == (BATCH, PRED_LEN, D_MODEL), pred.shape
    assert bool(jnp.all(jnp.isfinite(pred)))

    # multi-sample MC path: one fused pallas_call, mc grid axis (parallel on v7x's 2 TCs)
    samples = hf_bayesian_autoformer_predict(params, x_enc, x_mark_enc, x_dec, x_mark_dec,
                                             k_drop, mc_samples=4)
    samples = jax.block_until_ready(samples)
    assert samples.shape == (4, BATCH, PRED_LEN, D_MODEL), samples.shape
    assert bool(jnp.all(jnp.isfinite(samples)))

    print("KERNEL_OK")
</pallas_src>

<mosaic_0001>
module attributes {stable_mosaic.version = 11 : i64} {
  func.func @_fused_kernel(%arg0: i32, %arg1: memref<32x4xf32, #tpu.memory_space<vmem>>, %arg2: memref<32x4xf32, #tpu.memory_space<vmem>>, %arg3: memref<4x4xf32, #tpu.memory_space<vmem>>, %arg4: memref<2x32xf32, #tpu.memory_space<vmem>>, %arg5: memref<16x4xf32, #tpu.memory_space<vmem>>, %arg6: memref<4x32xf32, #tpu.memory_space<vmem>>, %arg7: memref<4x32xf32, #tpu.memory_space<vmem>>, %arg8: memref<1x32xf32, #tpu.memory_space<vmem>>, %arg9: memref<16x2xf32, #tpu.memory_space<vmem>>, %arg10: memref<1x16x32xf32, #tpu.memory_space<vmem>>, %arg11: memref<1x16x32xf32, #tpu.memory_space<vmem>>, %arg12: memref<1x16x32xf32, #tpu.memory_space<vmem>>) attributes {dimension_semantics = [#tpu.dimension_semantics<parallel>], iteration_bounds = array<i64: 1>, scalar_prefetch = 0 : i64, scratch_operands = 0 : i64, tpu.core_type = #tpu.core_type<tc>, window_params = [{pipeline_mode = #tpu.pipeline_mode<synchronous>, transform_indices = @transform_0, window_bounds = array<i64: 32, 4>}, {pipeline_mode = #tpu.pipeline_mode<synchronous>, transform_indices = @transform_1, window_bounds = array<i64: 32, 4>}, {pipeline_mode = #tpu.pipeline_mode<synchronous>, transform_indices = @transform_2, window_bounds = array<i64: 4, 4>}, {pipeline_mode = #tpu.pipeline_mode<synchronous>, transform_indices = @transform_3, window_bounds = array<i64: 2, 32>}, {pipeline_mode = #tpu.pipeline_mode<synchronous>, transform_indices = @transform_4, window_bounds = array<i64: 16, 4>}, {pipeline_mode = #tpu.pipeline_mode<synchronous>, transform_indices = @transform_5, window_bounds = array<i64: 4, 32>}, {pipeline_mode = #tpu.pipeline_mode<synchronous>, transform_indices = @transform_6, window_bounds = array<i64: 4, 32>}, {pipeline_mode = #tpu.pipeline_mode<synchronous>, transform_indices = @transform_7, window_bounds = array<i64: 1, 32>}, {pipeline_mode = #tpu.pipeline_mode<synchronous>, transform_indices = @transform_8, window_bounds = array<i64: 16, 2>}, {transform_indices = @transform_9, window_bounds = array<i64: 1, 16, 32>}, {transform_indices = @transform_10, window_bounds = array<i64: 1, 16, 32>}, {transform_indices = @transform_11, window_bounds = array<i64: 1, 16, 32>}]} {
    %c0 = arith.constant 0 : index
    %c0_0 = arith.constant 0 : index
    %0 = vector.load %arg1[%c0, %c0_0] : memref<32x4xf32, #tpu.memory_space<vmem>>, vector<32x4xf32>
    %c0_1 = arith.constant 0 : index
    %c0_2 = arith.constant 0 : index
    %1 = vector.load %arg2[%c0_1, %c0_2] : memref<32x4xf32, #tpu.memory_space<vmem>>, vector<32x4xf32>
    %c0_3 = arith.constant 0 : index
    %c0_4 = arith.constant 0 : index
    %2 = vector.load %arg3[%c0_3, %c0_4] : memref<4x4xf32, #tpu.memory_space<vmem>>, vector<4x4xf32>
    %cst = arith.constant dense<0.000000e+00> : vector<32x4xf32>
    %3 = tpu.matmul %1, %2, %cst {dimension_numbers = #tpu.dot_dimension_numbers<[1], [0], [0], [1], [0, 0, 1, 1], [], []>} : vector<32x4xf32>, vector<4x4xf32>, vector<32x4xf32> -> vector<32x4xf32>
    %4 = arith.addf %0, %3 : vector<32x4xf32>
    %c0_5 = arith.constant 0 : index
    %c0_6 = arith.constant 0 : index
    %5 = vector.load %arg4[%c0_5, %c0_6] : memref<2x32xf32, #tpu.memory_space<vmem>>, vector<2x32xf32>
    %cst_7 = arith.constant dense<0.000000e+00> : vector<2x4xf32>
    %6 = tpu.matmul %5, %4, %cst_7 {dimension_numbers = #tpu.dot_dimension_numbers<[1], [0], [0], [1], [0, 0, 1, 1], [], []>} : vector<2x32xf32>, vector<32x4xf32>, vector<2x4xf32> -> vector<2x4xf32>
    %c0_8 = arith.constant 0 : index
    %c0_9 = arith.constant 0 : index
    %7 = vector.load %arg7[%c0_8, %c0_9] : memref<4x32xf32, #tpu.memory_space<vmem>>, vector<4x32xf32>
    %cst_10 = arith.constant dense<0.000000e+00> : vector<2x32xf32>
    %8 = tpu.matmul %6, %7, %cst_10 {dimension_numbers = #tpu.dot_dimension_numbers<[1], [0], [0], [1], [0, 0, 1, 1], [], []>} : vector<2x4xf32>, vector<4x32xf32>, vector<2x32xf32> -> vector<2x32xf32>
    %c0_11 = arith.constant 0 : index
    %c0_12 = arith.constant 0 : index
    %9 = vector.load %arg5[%c0_11, %c0_12] : memref<16x4xf32, #tpu.memory_space<vmem>>, vector<16x4xf32>
    %c0_13 = arith.constant 0 : index
    %c0_14 = arith.constant 0 : index
    %10 = vector.load %arg6[%c0_13, %c0_14] : memref<4x32xf32, #tpu.memory_space<vmem>>, vector<4x32xf32>
    %cst_15 = arith.constant dense<0.000000e+00> : vector<16x32xf32>
    %11 = tpu.matmul %9, %10, %cst_15 {dimension_numbers = #tpu.dot_dimension_numbers<[1], [0], [0], [1], [0, 0, 1, 1], [], []>} : vector<16x4xf32>, vector<4x32xf32>, vector<16x32xf32> -> vector<16x32xf32>
    %c0_16 = arith.constant 0 : index
    %c0_17 = arith.constant 0 : index
    %12 = vector.load %arg9[%c0_16, %c0_17] : memref<16x2xf32, #tpu.memory_space<vmem>>, vector<16x2xf32>
    %cst_18 = arith.constant dense<0.000000e+00> : vector<16x32xf32>
    %13 = tpu.matmul %12, %8, %cst_18 {dimension_numbers = #tpu.dot_dimension_numbers<[1], [0], [0], [1], [0, 0, 1, 1], [], []>} : vector<16x2xf32>, vector<2x32xf32>, vector<16x32xf32> -> vector<16x32xf32>
    %14 = arith.addf %11, %13 : vector<16x32xf32>
    %c0_19 = arith.constant 0 : index
    %c0_20 = arith.constant 0 : index
    %15 = vector.load %arg8[%c0_19, %c0_20] : memref<1x32xf32, #tpu.memory_space<vmem>>, vector<1x32xf32>
    %16 = vector.broadcast %15 : vector<1x32xf32> to vector<16x32xf32>
    %17 = arith.addf %14, %16 : vector<16x32xf32>
    %c0_21 = arith.constant 0 : index
    %c0_22 = arith.constant 0 : index
    %c0_23 = arith.constant 0 : index
    %18 = vector.load %arg10[%c0_21, %c0_22, %c0_23] : memref<1x16x32xf32, #tpu.memory_space<vmem>>, vector<1x16x32xf32>
    %19 = vector.shape_cast %18 : vector<1x16x32xf32> to vector<16x32xf32>
    %c0_24 = arith.constant 0 : index
    %c0_25 = arith.constant 0 : index
    %c0_26 = arith.constant 0 : index
    %20 = vector.load %arg11[%c0_24, %c0_25, %c0_26] : memref<1x16x32xf32, #tpu.memory_space<vmem>>, vector<1x16x32xf32>
    %21 = vector.shape_cast %20 : vector<1x16x32xf32> to vector<16x32xf32>
    %cst_27 = arith.constant 1.000000e-01 : f32
    %22 = vector.broadcast %cst_27 : f32 to vector<16x32xf32>
    %23 = arith.cmpf oge, %19, %22 : vector<16x32xf32>
    %cst_28 = arith.constant 1.11111116 : f32
    %24 = vector.broadcast %cst_28 : f32 to vector<16x32xf32>
    %25 = arith.mulf %17, %24 : vector<16x32xf32>
    %cst_29 = arith.constant 0.000000e+00 : f32
    %26 = vector.broadcast %cst_29 : f32 to vector<16x32xf32>
    %27 = arith.select %23, %25, %26 : vector<16x32xi1>, vector<16x32xf32>
    %cst_30 = arith.constant 1.500000e-01 : f32
    %28 = vector.broadcast %cst_30 : f32 to vector<16x32xf32>
    %29 = arith.cmpf oge, %21, %28 : vector<16x32xf32>
    %cst_31 = arith.constant 1.17647064 : f32
    %30 = vector.broadcast %cst_31 : f32 to vector<16x32xf32>
    %31 = arith.mulf %27, %30 : vector<16x32xf32>
    %cst_32 = arith.constant 0.000000e+00 : f32
    %32 = vector.broadcast %cst_32 : f32 to vector<16x32xf32>
    %33 = arith.select %29, %31, %32 : vector<16x32xi1>, vector<16x32xf32>
    %c0_33 = arith.constant 0 : index
    %c0_34 = arith.constant 0 : index
    %c0_35 = arith.constant 0 : index
    %34 = vector.load %arg12[%c0_33, %c0_34, %c0_35] : memref<1x16x32xf32, #tpu.memory_space<vmem>>, vector<1x16x32xf32>
    %35 = vector.shape_cast %34 : vector<1x16x32xf32> to vector<16x32xf32>
    %36 = vector.shape_cast %33 : vector<16x32xf32> to vector<1x16x32xf32>
    tpu.vector_store %arg12[%c0_33, %c0_34, %c0_35], %36 {strides = array<i32>} : memref<1x16x32xf32, #tpu.memory_space<vmem>>, vector<1x16x32xf32>,
    return
  }
  func.func @transform_0(%arg0: i32) -> (i32, i32) {
    %c0_i32 = arith.constant 0 : i32
    %c0_i32_0 = arith.constant 0 : i32
    %c0_i32_1 = arith.constant 0 : i32
    return %c0_i32, %c0_i32_0 : i32, i32
  }
  func.func @transform_1(%arg0: i32) -> (i32, i32) {
    %c0_i32 = arith.constant 0 : i32
    %c0_i32_0 = arith.constant 0 : i32
    %c0_i32_1 = arith.constant 0 : i32
    return %c0_i32, %c0_i32_0 : i32, i32
  }
  func.func @transform_2(%arg0: i32) -> (i32, i32) {
    %c0_i32 = arith.constant 0 : i32
    %c0_i32_0 = arith.constant 0 : i32
    %c0_i32_1 = arith.constant 0 : i32
    return %c0_i32, %c0_i32_0 : i32, i32
  }
  func.func @transform_3(%arg0: i32) -> (i32, i32) {
    %c0_i32 = arith.constant 0 : i32
    %c0_i32_0 = arith.constant 0 : i32
    %c0_i32_1 = arith.constant 0 : i32
    return %c0_i32, %c0_i32_0 : i32, i32
  }
  func.func @transform_4(%arg0: i32) -> (i32, i32) {
    %c0_i32 = arith.constant 0 : i32
    %c0_i32_0 = arith.constant 0 : i32
    %c0_i32_1 = arith.constant 0 : i32
    return %c0_i32, %c0_i32_0 : i32, i32
  }
  func.func @transform_5(%arg0: i32) -> (i32, i32) {
    %c0_i32 = arith.constant 0 : i32
    %c0_i32_0 = arith.constant 0 : i32
    %c0_i32_1 = arith.constant 0 : i32
    return %c0_i32, %c0_i32_0 : i32, i32
  }
  func.func @transform_6(%arg0: i32) -> (i32, i32) {
    %c0_i32 = arith.constant 0 : i32
    %c0_i32_0 = arith.constant 0 : i32
    %c0_i32_1 = arith.constant 0 : i32
    return %c0_i32, %c0_i32_0 : i32, i32
  }
  func.func @transform_7(%arg0: i32) -> (i32, i32) {
    %c0_i32 = arith.constant 0 : i32
    %c0_i32_0 = arith.constant 0 : i32
    %c0_i32_1 = arith.constant 0 : i32
    return %c0_i32, %c0_i32_0 : i32, i32
  }
  func.func @transform_8(%arg0: i32) -> (i32, i32) {
    %c0_i32 = arith.constant 0 : i32
    %c0_i32_0 = arith.constant 0 : i32
    %c0_i32_1 = arith.constant 0 : i32
    return %c0_i32, %c0_i32_0 : i32, i32
  }
  func.func @transform_9(%arg0: i32) -> (i32, i32, i32) {
    %c0_i32 = arith.constant 0 : i32
    %c0_i32_0 = arith.constant 0 : i32
    %c0_i32_1 = arith.constant 0 : i32
    return %arg0, %c0_i32, %c0_i32_0 : i32, i32, i32
  }
  func.func @transform_10(%arg0: i32) -> (i32, i32, i32) {
    %c0_i32 = arith.constant 0 : i32
    %c0_i32_0 = arith.constant 0 : i32
    %c0_i32_1 = arith.constant 0 : i32
    return %arg0, %c0_i32, %c0_i32_0 : i32, i32, i32
  }
  func.func @transform_11(%arg0: i32) -> (i32, i32, i32) {
    %c0_i32 = arith.constant 0 : i32
    %c0_i32_0 = arith.constant 0 : i32
    %c0_i32_1 = arith.constant 0 : i32
    return %arg0, %c0_i32, %c0_i32_0 : i32, i32, i32
  }
}

</mosaic_0001>

<bundles_post_ra>
// kernel: hf_bayesian_autoformer_predict.3
= control target key start
LH: loop header
LB: loop body
LE: loop exit
PB: predicated region body
PF: predicated region fallthrough
CT: control target
= control target key end

     0   :  { %vm61_vm0 = vcmask 1043456   ;;  %vm48_vm1 = vcmask 31744   ;;  %s451_s0 = inlined_call_operand.vmem [shape: f32[32,4], index: 0, kind: input, shape index: {}]   ;;  %s452_s1 = inlined_call_operand.vmem [shape: f32[32,4], index: 1, kind: input, shape index: {}]   ;;  %s453_s2 = inlined_call_operand.vmem [shape: f32[4,4], index: 2, kind: input, shape index: {}]   ;;  %s454_s3 = inlined_call_operand.vmem [shape: f32[2,32], index: 3, kind: input, shape index: {}]   ;;  %s455_s4 = inlined_call_operand.vmem [shape: f32[16,4], index: 4, kind: input, shape index: {}]   ;;  %s456_s5 = inlined_call_operand.vmem [shape: f32[4,32], index: 5, kind: input, shape index: {}]   ;;  %s457_s6 = inlined_call_operand.vmem [shape: f32[4,32], index: 6, kind: input, shape index: {}]   ;;  %s458_s7 = inlined_call_operand.vmem [shape: f32[1,32], index: 7, kind: input, shape index: {}]   ;;  %s459_s8 = inlined_call_operand.vmem [shape: f32[16,2], index: 8, kind: input, shape index: {}]   ;;  %s460_s9 = inlined_call_operand.vmem [shape: f32[1,16,32], index: 9, kind: input, shape index: {}]   ;;  %s461_s10 = inlined_call_operand.vmem [shape: f32[1,16,32], index: 10, kind: input, shape index: {}]   ;;  %s462_s11 = inlined_call_operand.hbm [shape: f32[1,16,32], index: 11, kind: output, shape index: {}]  }
   0x1   :  { %v47_v0 = vld [vmem:[%s453_s2] sm:$0xf]  ;;  %v46_v2 = vld [vmem:[%s452_s1 + $0x18] sm:$0xff] }
   0x2   :  { %v43_v1 = vld [vmem:[%s452_s1] sm:$0xff]  ;;  %263 = vmatpush.msk.msra.mxu0 %vm61_vm0, %v47_v0  ;;  %277 = vmatpush.msk.msra.mxu1 %vm61_vm0, %v47_v0 }
   0x3   :  { %264 = vmatmul.msk.f32.vlgmr.msra.gmra.mxu0 %vm48_vm1, %v43_v1  ;;  %267 = vmatmul.msk.f32.vlgmr.msra.gmra.mxu1 %vm48_vm1, %v46_v2 }
   0x4   :  { %16 = vsyncpa [#allocation3], 0  ;;  %v44_v3 = vld [vmem:[%s452_s1 + $0x8] sm:$0xff]  ;;  %v45_v4 = vld [vmem:[%s452_s1 + $0x10] sm:$0xff]  ;;  %vm99_vm2 = vcmask 261120   ;;  %vm162_vm3 = vcmask 1041408  }
   0x5   :  { %v42_v5 = vld [vmem:[%s451_s0 + $0x18] sm:$0xff]  ;;  %v41_v10 = vld [vmem:[%s451_s0 + $0x10] sm:$0xff]  ;;  %v40_v11 = vld [vmem:[%s451_s0 + $0x8] sm:$0xff]  ;;  %vm155_vm4 = vcmask 15360   ;;  %s308_s30 = smov [#allocation2]   ;;  %s251_s14 = sshll.u32 %s462_s11, 4  ;;  %s252_s14 = int_to_ptr.hbm [resolvable:$true] %s251_s14 }
   0x6   :  { %v39_v14 = vld [vmem:[%s451_s0] sm:$0xff]  ;;  %v151_v22 = vld [vmem:[%s455_s4 + $0x8] sm:$0xff]  ;;  %s249_s12 = sshll.u32 %s308_s30, 4  ;;  %s310_s15 = smov 8   ;;  %s250_s12 = int_to_ptr.vmem [resolvable:$true] %s249_s12 }
   0x7   :  { %v98_v17 = vld [vmem:[%s454_s3] sm:$0x3]  ;;  %v154_v25 = vld [vmem:[%s459_s8 + $0x8] sm:$0xff] }
   0x8   :  { %v123_v18 = vld [vmem:[%s457_s6] sm:$0xf]  ;;  %v228_v39 = vld [vmem:[%s460_s9 + $0x8] sm:$0xff] }
   0x9   :  { %269 = vmatpush.msk.msra.mxu2 %vm61_vm0, %v123_v18  ;;  %v152_v19 = vld [vmem:[%s456_s5] sm:$0xf]  ;;  %v230_v42 = vld [vmem:[%s461_s10 + $0x8] sm:$0xff]  ;;  %vm232_vm7 = vcmp.ge.f32.partialorder %v228_v39, 0.1 }
   0xa   :  { %v150_v21 = vld [vmem:[%s455_s4] sm:$0xff]  ;;  %vm238_vm8 = vcmp.ge.f32.partialorder %v230_v42, 0.15 }
   0xb   :  { %265 = vmatmul.msk.f32.gmra.mxu0 %vm48_vm1, %v44_v3  ;;  %274 = vmatpush.msk.msrb.mxu2 %vm61_vm0, %v152_v19  ;;  %v153_v23 = vld [vmem:[%s459_s8] sm:$0xff] }
   0xc   :  { %v281_v27 = vld [vmem:[%s458_s7] ss:$0 sm:$0xff] }
   0xd   :  { %v227_v30 = vld [vmem:[%s460_s9] sm:$0xff]  ;;  %s309_s9 = smov 128  }
   0xe   :  { %v229_v32 = vld [vmem:[%s461_s10] sm:$0xff]  ;;  %vm231_vm5 = vcmp.ge.f32.partialorder %v227_v30, 0.1 }
   0xf   :  { %vm237_vm6 = vcmp.ge.f32.partialorder %v229_v32, 0.15 }
  0x13   :  { %266 = vmatmul.msk.f32.gmra.mxu0 %vm48_vm1, %v45_v4 }
  0x80   :  { %v82_v6 = vpop.f32.mrf.mxu0  ;;  %v91_v7 = vpop.f32.mrf.mxu1 }
  0x81   :  { %v97_v8 = vadd.f32 %v91_v7, %v42_v5  ;;  %v94_v16 = vadd.f32 %v82_v6, %v39_v14 }
  0x83   :  { %115 = vmatpush.msrb.mxu1 %v97_v8 }
  0x88   :  { %v85_v9 = vpop.f32.mrf.mxu0 }
  0x89   :  { %v95_v15 = vadd.f32 %v85_v9, %v40_v11 }
  0x90   :  { %v88_v12 = vpop.f32.mrf.mxu0 }
  0x91   :  { %v96_v13 = vadd.f32 %v88_v12, %v41_v10 }
  0x93   :  { %116 = vmatpush.msrb.mxu1 %v96_v13 }
  0x95   :  { %117 = vmatpush.msrb.mxu1 %v95_v15 }
  0x97   :  { %118 = vmatpush.msrb.mxu1 %v94_v16 }
  0x98   :  { %268 = vmatmul.msk.f32.vlgmr.msrb.gmra.mxu1 %vm99_vm2, %v98_v17 }
 0x115   :  { %v120_v20 = vpop.f32.mrf.mxu1 }
 0x116   :  { %270 = vmatmul.msk.f32.vlgmr.msra.gmra.mxu2 %vm48_vm1, %v120_v20 }
 0x11e   :  { %275 = vmatmul.msk.f32.vlgmr.msrb.gmra.mxu2 %vm48_vm1, %v150_v21 }
 0x126   :  { %276 = vmatmul.msk.f32.gmra.mxu2 %vm48_vm1, %v151_v22 }
 0x199   :  { %v147_v24 = vpop.f32.mrf.mxu2 }
 0x19a   :  { %271 = vmatpush.msk.msra.mxu3 %vm162_vm3, %v147_v24 }
 0x19b   :  { %272 = vmatmul.msk.f32.vlgmr.msra.gmra.mxu3 %vm155_vm4, %v153_v23 }
 0x1a1   :  { %v215_v26 = vpop.f32.mrf.mxu2 }
 0x1a3   :  { %273 = vmatmul.msk.f32.gmra.mxu3 %vm155_vm4, %v154_v25 }
 0x1a9   :  { %v218_v34 = vpop.f32.mrf.mxu2 }
 0x21e   :  { %v183_v28 = vpop.f32.mrf.mxu3 }
 0x21f   :  { %v216_v29 = vadd.f32 %v215_v26, %v183_v28 }
 0x221   :  { %v225_v31 = vadd.f32 %v281_v27, %v216_v29 }
 0x223   :  { %v233_v33 = vmul.f32 1.1111112, %v225_v31 }
 0x225   :  { %v235_v35 = vsel %vm231_vm5, %v233_v33, 0.0 }
 0x226   :  { %v239_v36 = vmul.f32 1.1764706, %v235_v35  ;;  %v186_v37 = vpop.f32.mrf.mxu3 }
 0x227   :  { %v219_v38 = vadd.f32 %v218_v34, %v186_v37 }
 0x228   :  { %v241_v40 = vsel %vm237_vm6, %v239_v36, 0.0 }
 0x229   :  { %243 = vst.msk [vmem:[#allocation2] sm:$0xff] %vm99_vm2, %v241_v40  ;;  %v226_v41 = vadd.f32 %v281_v27, %v219_v38 }
 0x22b   :  { %v234_v43 = vmul.f32 1.1111112, %v226_v41 }
 0x22d   :  { %v236_v44 = vsel %vm232_vm7, %v234_v43, 0.0 }
 0x22e   :  { %v240_v45 = vmul.f32 1.1764706, %v236_v44 }
 0x230   :  { %v242_v46 = vsel %vm238_vm8, %v240_v45, 0.0 }
 0x231   :  { %244 = vst.msk [vmem:[#allocation2 + $0x8] sm:$0xff] %vm99_vm2, %v242_v46 }
 0x232   :  { %257 = dma.vmem_to_hbm [thread:$0]  %s250_s12, 256, %s252_s14, [#allocation3], %s309_s9, %s309_s9, %s310_s15  }
 0x233   :  { %306 = dma.done.wait [#allocation3], 256  }
 0x234   :  { %307 = vsyncadd [#allocation3], 4294967040 }
 0x235   :  { %262 = vsyncpa [#allocation3], 1 }

</bundles_post_ra>
